<compile_context>
chip_gen: v7x
topology: tpu7x:2x2x1
jax: 0.10.0
libtpu: 0.0.40
codegen_flags: <defaults>
</compile_context>

<pallas_src>
import functools
import jax
import jax.numpy as jnp
from jax.experimental import pallas as pl
from jax.experimental.pallas import tpu as pltpu


def _round_up(x, m):
    return (x + m - 1) // m * m


def _apply_act(y, act):
    if act == "relu":
        return jnp.maximum(y, 0.0)
    if act == "sigmoid":
        return jax.nn.sigmoid(y)
    return y


# ---------------- Pallas kernels (the hot path) ----------------

def _mm_kernel(a_ref, b_ref, c_ref, o_ref, *, act):
    y = jnp.dot(a_ref[...], b_ref[...], preferred_element_type=jnp.float32)
    y = y + c_ref[...]
    o_ref[...] = _apply_act(y, act)


def _mm_res_kernel(a_ref, b_ref, c_ref, r_ref, o_ref, *, act):
    y = jnp.dot(a_ref[...], b_ref[...], preferred_element_type=jnp.float32)
    y = y + c_ref[...] + r_ref[...]
    o_ref[...] = _apply_act(y, act)


def _pick_tiles(M, Np):
    """Adaptive (TM, Mp, TN) so tiny layers don't pad M up to 128 and big layers use
    large tiles; if the M grid collapses to a single step, split N for megacore."""
    Mr = _round_up(M, 16)
    if Mr <= 512:
        TM = Mr
    else:
        TM = 512
    Mp = _round_up(M, TM)
    grid_m = Mp // TM

    TN = Np
    if grid_m == 1 and Np >= 256 and (Np // 2) % 128 == 0:
        TN = Np // 2
    return TM, Mp, TN


def fused_matmul(A, B, bias, act="none", residual=None):
    """out[:M,:N] = act(A @ B + bias (+ residual)); A/B fed to the MXU in bf16,
    accumulation and epilogue in f32."""
    M, K = A.shape
    _, N = B.shape
    Kp, Np = _round_up(K, 128), _round_up(N, 128)
    TM, Mp, TN = _pick_tiles(M, Np)

    Ap = jnp.pad(A.astype(jnp.bfloat16), ((0, Mp - M), (0, Kp - K)))
    Bp = jnp.pad(B.astype(jnp.bfloat16), ((0, Kp - K), (0, Np - N)))
    cp = jnp.pad(bias.astype(jnp.float32).reshape(1, N), ((0, 0), (0, Np - N)))

    in_specs = [
        pl.BlockSpec((TM, Kp), lambda i, j: (i, 0)),
        pl.BlockSpec((Kp, TN), lambda i, j: (0, j)),
        pl.BlockSpec((1, TN), lambda i, j: (0, j)),
    ]
    args = [Ap, Bp, cp]

    if residual is not None:
        Rp = jnp.pad(residual.astype(jnp.float32), ((0, Mp - M), (0, Np - N)))
        in_specs.append(pl.BlockSpec((TM, TN), lambda i, j: (i, j)))
        args.append(Rp)
        kern = functools.partial(_mm_res_kernel, act=act)
    else:
        kern = functools.partial(_mm_kernel, act=act)

    out = pl.pallas_call(
        kern,
        out_shape=jax.ShapeDtypeStruct((Mp, Np), jnp.float32),
        grid=(Mp // TM, Np // TN),
        in_specs=in_specs,
        out_specs=pl.BlockSpec((TM, TN), lambda i, j: (i, j)),
        compiler_params=pltpu.CompilerParams(
            dimension_semantics=("parallel", "parallel"),
            vmem_limit_bytes=48 * 1024 * 1024,  # fits v7x's 64 MiB/TC with headroom
        ),
    )(*args)
    return out[:M, :N]


# ---------------- Conv / pool glue (im2col, NHWC) ----------------

def conv2d_fused(x, w, bias, stride=1, padding=0, act="none", residual=None, scale=None):
    """x: NHWC; w: (Cout, Cin, kh, kw) (PyTorch layout); returns NHWC.
    `scale` (folded BN gamma/sqrt(var+eps)) is folded into the weight matrix host-side."""
    N, H, W, Cin = x.shape
    Cout, _, kh, kw = w.shape
    xp = jnp.pad(x, ((0, 0), (padding, padding), (padding, padding), (0, 0)))
    Ho = (H + 2 * padding - kh) // stride + 1
    Wo = (W + 2 * padding - kw) // stride + 1

    cols = []
    for i in range(kh):
        for j in range(kw):
            cols.append(
                xp[:, i : i + (Ho - 1) * stride + 1 : stride,
                      j : j + (Wo - 1) * stride + 1 : stride, :]
            )
    patches = jnp.concatenate(cols, axis=-1)            # (N, Ho, Wo, kh*kw*Cin)
    A = patches.reshape(N * Ho * Wo, kh * kw * Cin)
    B = jnp.transpose(w, (2, 3, 1, 0)).reshape(kh * kw * Cin, Cout)
    if scale is not None:
        B = B * scale[None, :]                           # fold BN scale into weights
    res = None if residual is None else residual.reshape(N * Ho * Wo, Cout)

    out = fused_matmul(A, B, bias, act=act, residual=res)
    return out.reshape(N, Ho, Wo, Cout)


def maxpool2d(x, ksize=3, stride=2, padding=1):
    N, H, W, C = x.shape
    xp = jnp.pad(x, ((0, 0), (padding, padding), (padding, padding), (0, 0)),
                 constant_values=-jnp.inf)
    Ho = (H + 2 * padding - ksize) // stride + 1
    Wo = (W + 2 * padding - ksize) // stride + 1
    out = None
    for i in range(ksize):
        for j in range(ksize):
            win = xp[:, i : i + (Ho - 1) * stride + 1 : stride,
                        j : j + (Wo - 1) * stride + 1 : stride, :]
            out = win if out is None else jnp.maximum(out, win)
    return out


def upsample2x(x):  # nn.Upsample(scale_factor=2), default nearest
    return jnp.repeat(jnp.repeat(x, 2, axis=1), 2, axis=2)


# ---------------- Parameters (deterministic init) ----------------

def _conv_w(key, cout, cin, kh, kw):
    fan_in = cin * kh * kw
    return jax.random.normal(key, (cout, cin, kh, kw), jnp.float32) * jnp.sqrt(2.0 / fan_in)


def _bn(c):  # (gamma, beta, running_mean, running_var) — PyTorch default init
    return (jnp.ones((c,), jnp.float32), jnp.zeros((c,), jnp.float32),
            jnp.zeros((c,), jnp.float32), jnp.ones((c,), jnp.float32))


def _bn_fold(bn, eps=1e-5):
    gamma, beta, mean, var = bn
    scale = gamma / jnp.sqrt(var + eps)
    return scale, beta - scale * mean


def make_params(key):
    keys = iter(jax.random.split(key, 64))
    params = {"conv1": _conv_w(next(keys), 64, 3, 7, 7), "bn1": _bn(64)}

    layer_cfg = [(64, 64, 3, 1), (64, 128, 4, 2), (128, 256, 6, 2), (256, 512, 3, 2)]
    for li, (cin, cout, nblocks, stride) in enumerate(layer_cfg):
        blocks = []
        for b in range(nblocks):
            s = stride if b == 0 else 1
            in_c = cin if b == 0 else cout
            blk = {
                "conv1": _conv_w(next(keys), cout, in_c, 3, 3), "bn1": _bn(cout),
                "conv2": _conv_w(next(keys), cout, cout, 3, 3), "bn2": _bn(cout),
                "stride": s,
            }
            if s != 1 or in_c != cout:
                blk["down_conv"] = _conv_w(next(keys), cout, in_c, 1, 1)
                blk["down_bn"] = _bn(cout)
            blocks.append(blk)
        params[f"layer{li + 1}"] = blocks

    dec = []
    for cin, cout, k in [(512, 256, 3), (256, 128, 3), (128, 64, 3), (64, 1, 1)]:
        kw_, kb_ = jax.random.split(next(keys))
        dec.append((_conv_w(kw_, cout, cin, k, k),
                    jax.random.normal(kb_, (cout,), jnp.float32) * 0.01))
    params["decoder"] = dec
    return params


# ---------------- Forward pass ----------------

def basic_block(x, blk):
    stride = blk["stride"]
    if "down_conv" in blk:
        ds, db = _bn_fold(blk["down_bn"])
        identity = conv2d_fused(x, blk["down_conv"], db, stride=stride, padding=0, scale=ds)
    else:
        identity = x
    s1, b1 = _bn_fold(blk["bn1"])
    s2, b2 = _bn_fold(blk["bn2"])
    out = conv2d_fused(x, blk["conv1"], b1, stride=stride, padding=1, act="relu", scale=s1)
    out = conv2d_fused(out, blk["conv2"], b2, stride=1, padding=1, act="relu",
                       residual=identity, scale=s2)
    return out


def forward(params, x_nchw):
    x = jnp.transpose(x_nchw, (0, 2, 3, 1))  # NCHW -> NHWC
    s, b = _bn_fold(params["bn1"])
    x = conv2d_fused(x, params["conv1"], b, stride=2, padding=3, act="relu", scale=s)
    x = maxpool2d(x, 3, 2, 1)
    for li in range(4):
        for blk in params[f"layer{li + 1}"]:
            x = basic_block(x, blk)
    # decoder: conv, up, conv, up, conv, up, conv1x1 (sigmoid fused into last conv)
    for idx, (w, bias) in enumerate(params["decoder"]):
        _, _, kh, _ = w.shape
        pad = 1 if kh == 3 else 0
        act = "sigmoid" if idx == 3 else "none"
        x = conv2d_fused(x, w, bias, stride=1, padding=pad, act=act)
        if idx < 3:
            x = upsample2x(x)
    return jnp.transpose(x, (0, 3, 1, 2))  # NHWC -> NCHW


if __name__ == "__main__":
    key = jax.random.PRNGKey(0)
    pkey, xkey = jax.random.split(key)
    params = make_params(pkey)
    x = jax.random.normal(xkey, (2, 3, 64, 64), jnp.float32)  # NCHW, like PyTorch

    out = forward(params, x)
    out = jax.block_until_ready(out)
    assert out.shape == (2, 1, 16, 16), out.shape
    assert bool(jnp.all(jnp.isfinite(out)))
    assert bool(jnp.all((out >= 0.0) & (out <= 1.0)))
    print("KERNEL_OK")
</pallas_src>

<mosaic_0001>
module attributes {stable_mosaic.version = 11 : i64} {
  func.func @_mm_kernel(%arg0: i32, %arg1: i32, %arg2: memref<512x256xbf16, #tpu.memory_space<vmem>>, %arg3: memref<256x128xbf16, #tpu.memory_space<vmem>>, %arg4: memref<1x128xf32, #tpu.memory_space<vmem>>, %arg5: memref<512x128xf32, #tpu.memory_space<vmem>>) attributes {dimension_semantics = [#tpu.dimension_semantics<parallel>, #tpu.dimension_semantics<parallel>], iteration_bounds = array<i64: 4, 1>, scalar_prefetch = 0 : i64, scratch_operands = 0 : i64, tpu.core_type = #tpu.core_type<tc>, window_params = [{transform_indices = @transform_0, window_bounds = array<i64: 512, 256>}, {transform_indices = @transform_1, window_bounds = array<i64: 256, 128>}, {transform_indices = @transform_2, window_bounds = array<i64: 1, 128>}, {transform_indices = @transform_3, window_bounds = array<i64: 512, 128>}]} {
    %c0 = arith.constant 0 : index
    %c0_0 = arith.constant 0 : index
    %0 = vector.load %arg2[%c0, %c0_0] : memref<512x256xbf16, #tpu.memory_space<vmem>>, vector<512x256xbf16>
    %c0_1 = arith.constant 0 : index
    %c0_2 = arith.constant 0 : index
    %1 = vector.load %arg3[%c0_1, %c0_2] : memref<256x128xbf16, #tpu.memory_space<vmem>>, vector<256x128xbf16>
    %cst = arith.constant dense<0.000000e+00> : vector<512x128xf32>
    %2 = tpu.matmul %0, %1, %cst {dimension_numbers = #tpu.dot_dimension_numbers<[1], [0], [0], [1], [0, 0, 1, 1], [], []>} : vector<512x256xbf16>, vector<256x128xbf16>, vector<512x128xf32> -> vector<512x128xf32>
    %c0_3 = arith.constant 0 : index
    %c0_4 = arith.constant 0 : index
    %3 = vector.load %arg4[%c0_3, %c0_4] : memref<1x128xf32, #tpu.memory_space<vmem>>, vector<1x128xf32>
    %4 = vector.broadcast %3 : vector<1x128xf32> to vector<512x128xf32>
    %5 = arith.addf %2, %4 : vector<512x128xf32>
    %cst_5 = arith.constant 0.000000e+00 : f32
    %6 = vector.broadcast %cst_5 : f32 to vector<512x128xf32>
    %7 = arith.maximumf %5, %6 : vector<512x128xf32>
    %c0_6 = arith.constant 0 : index
    %c0_7 = arith.constant 0 : index
    %8 = vector.load %arg5[%c0_6, %c0_7] : memref<512x128xf32, #tpu.memory_space<vmem>>, vector<512x128xf32>
    tpu.vector_store %arg5[%c0_6, %c0_7], %7 {strides = array<i32>} : memref<512x128xf32, #tpu.memory_space<vmem>>, vector<512x128xf32>,
    return
  }
  func.func @transform_0(%arg0: i32, %arg1: i32) -> (i32, i32) {
    %c0_i32 = arith.constant 0 : i32
    %c0_i32_0 = arith.constant 0 : i32
    return %arg0, %c0_i32 : i32, i32
  }
  func.func @transform_1(%arg0: i32, %arg1: i32) -> (i32, i32) {
    %c0_i32 = arith.constant 0 : i32
    %c0_i32_0 = arith.constant 0 : i32
    return %c0_i32, %arg1 : i32, i32
  }
  func.func @transform_2(%arg0: i32, %arg1: i32) -> (i32, i32) {
    %c0_i32 = arith.constant 0 : i32
    %c0_i32_0 = arith.constant 0 : i32
    return %c0_i32, %arg1 : i32, i32
  }
  func.func @transform_3(%arg0: i32, %arg1: i32) -> (i32, i32) {
    %c0_i32 = arith.constant 0 : i32
    return %arg0, %arg1 : i32, i32
  }
}

</mosaic_0001>

<bundles_post_ra>
// kernel: tpu_custom_call.1
= control target key start
LH: loop header
LB: loop body
LE: loop exit
PB: predicated region body
PF: predicated region fallthrough
CT: control target
= control target key end

     0   :  { %8 = vsyncpa [#allocation3], 0  ;;  %s2259_s0 = inlined_call_operand.hbm [shape: bf16[2048,256], index: 0, kind: input, shape index: {}]   ;;  %s2260_s1 = inlined_call_operand.hbm [shape: bf16[256,128], index: 1, kind: input, shape index: {}]   ;;  %s2261_s2 = inlined_call_operand.vmem [shape: f32[1,128], index: 2, kind: input, shape index: {}]   ;;  %s2262_s3 = inlined_call_operand.hbm [shape: f32[2048,128], index: 3, kind: output, shape index: {}]  }
   0x1   :  { %10 = vsyncpa [#allocation3 + $0x1], 0 }
   0x2   :  { %11 = vsyncpa [#allocation6], 0 }
   0x3   :  { %12 = vsyncpa [#allocation4], 0 }
   0x4   :  { %14 = vsyncpa [#allocation4 + $0x1], 0  ;;  %s1804_s12 = smov 0   ;;  %s1806_s13 = smov 0  }
   0x5   :  { %s1808_s14 = smov 0   ;;  %s1810_s15 = smov 0  }
   0x6   :  { %s1812_s16 = smov 0   ;;  %s1814_s17 = smov 0  }
   0x7 LB: > { %s1301_s18 = sadd.s32 4294967295, %s1772_s17   ;;  %s1302_s19 = sadd.s32 4294967294, %s1772_s17   ;;  %s1772_s17 = sphi %s1814_s17, %s20_s17   ;;  %s1768_s16 = sphi %s1812_s16, %s2285_s16   ;;  %s1764_s15 = sphi %s1810_s15, %s2284_s15   ;;  %s1760_s14 = sphi %s1808_s14, %s2283_s14   ;;  %s1756_s13 = sphi %s1806_s13, %s2282_s13   ;;  %s1752_s12 = sphi %s1804_s12, %s2281_s12  }
   0x8   : > { %p52_p0 = scmp.ne.s32.totalorder %s1756_s13, %s1752_s12  ;;  %p1838_p1 = scmp.eq.s32.totalorder %s1301_s18, 0 }
   0x9   : > { %p1842_p2 = scmp.eq.s32.totalorder %s1301_s18, 3  ;;  %p136_p3 = scmp.eq.s32.totalorder %s1302_s19, 3 }
   0xa   : > { %s2267_s20 = scalar_select %p1838_p1, 1, 0 }
   0xb   : > { %s2268_s21 = scalar_select %p1842_p2, 1, 0 }
   0xc   : > { %p1848_p4 = por %p1838_p1, %p52_p0  ;;  %p1303_p5 = scmp.ge.s32.totalorder %s1772_s17, 1 }
   0xd   : > { %p1853_p6 = por %p136_p3, %p52_p0  ;;  %p143_p7 = scmp.lt.s32.totalorder %s1772_s17, 5 }
   0xe   : > { %s2269_s22 = scalar_select %p1848_p4, 1, 0 }
   0xf   : > { %s2270_s23 = scalar_select %p1853_p6, 1, 0 }
  0x10   : > { %p1858_p8 = pnand %p1303_p5, %p143_p7  ;;  %s1774_s25 = smov [#allocation5]  }
  0x11   : > { %s157_s26 = sshll.u32 %s1774_s25, 4  ;;  %s32_s28 = sadd.s32 1, %s1768_s16  ;;  %s158_s26 = int_to_ptr.vmem [resolvable:$true] %s157_s26 }
  0x12   : > { %s2271_s24 = scalar_select %p1858_p8, 1, 0 }
  0x13   : > { %p1444_p9 = pneg %p1858_p8  ;;  %s1628_s4 = scalar_lea.hbm %s2260_s1, 2048 }
  0x14   : > { %p1629_p11 = scmp.ne.s32.totalorder %s2260_s1, %s1628_s4  ;;  %p1635_p3 = scmp.lt.u32.totalorder %s1628_s4, %s2260_s1 }
  0x15   : > { %p1866_p10 = pnand %p1444_p9, %p1838_p1 }
  0x17   : > { %p1630_p12 = pneg %p1866_p10 }
  0x19   : > { %p1631_p13 = pnand %p1630_p12, %p1629_p11 }
  0x1b   : > { %p1632_p0 = pneg %p1631_p13 }
  0x1d   : > { %p1637_p5 = pnand %p1635_p3, %p1632_p0 }
  0x1f   : > { %1640 = shalt.err (!%p1637_p5)
}
  0x20   : > { %s1641_s9 = scalar_lea.vmem %s158_s26, 2048  ;;  %p1649_p1 = scmp.lt.s32.totalorder %s158_s26, %s158_s26 }
  0x21   : > { %p1642_p7 = scmp.ne.s32.totalorder %s158_s26, %s1641_s9  ;;  %p1650_p4 = scmp.lt.s32.totalorder %s1641_s9, %s1641_s9 }
  0x23   : > { %p1644_p9 = pnand %p1642_p7, %p1630_p12  ;;  %p1651_p8 = por %p1650_p4, %p1649_p1 }
  0x25   : > { %p1645_p6 = pneg %p1644_p9 }
  0x27   : > { %p1652_p2 = pnand %p1651_p8, %p1645_p6 }
  0x29   : > { %1655 = shalt.err (!%p1652_p2)
}
  0x2a   : > { %s1775_s10 = smov 64   ;;  %s1776_s11 = smov 4  }
  0x2b   : > { %1447 = dma.hbm_to_vmem [thread:$0]  (!%p1866_p10), %s2260_s1, 2048, %s158_s26, [#allocation6], %s1775_s10, %s1775_s10, %s1776_s11  }
  0x2c   : > { %p34_p1 = scmp.ge.s32.totalorder %s32_s28, 4  ;;  %s39_s25 = sadd.s32 1, %s1760_s14 }
  0x2d   : > { %p46_p2 = scmp.ne.s32.totalorder %s1760_s14, %s1756_s13  ;;  %p47_p4 = scmp.eq.s32.totalorder %s1772_s17, 0 }
  0x2e   : > { %s2287_s28 = smov (%p34_p1, %s32_s28), 0  ;;  %p2274_p8 = scmp.ne.s32.totalorder %s2268_s21, 0 }
  0x2f   : > { %p1893_p6 = por %p47_p4, %p46_p2  ;;  %s36_s27 = ssub.s32 %s1768_s16, %s2287_s28 }
  0x30   : > { %p1899_p11 = por %p2274_p8, %p46_p2  ;;  %p1457_p12 = scmp.lt.s32.totalorder %s1772_s17, 4 }
  0x31   : > { %p37_p10 = scmp.eq.s32.totalorder %s36_s27, 0  ;;  %s177_s26 = sand.u32 1, %s1760_s14  }
  0x32   : > { %s1307_s4 = sshll.u32 %s177_s26, 9  ;;  %s1402_s6 = sshll.u32 %s1768_s16, 13 }
  0x33   : > { %s1908_s5 = scalar_select %p37_p10, %s1760_s14, %s39_s25  }
  0x34   : > { %s1914_s9 = scalar_lea.hbm %s2259_s0, %s1402_s6  ;;  %s181_s21 = scalar_lea.vmem [#allocation2], %s1307_s4 }
  0x35   : > { %s189_s10 = sshll.u32 %s181_s21, 4  ;;  %p1920_p13 = pnand %p1457_p12, %p1893_p6  ;;  %s1916_s10 = int_to_ptr.vmem [resolvable:$true] %s189_s10 }
  0x36   : > { %s1924_s18 = scalar_lea.sflag [#allocation3], %s177_s26  ;;  %s1656_s19 = scalar_lea.hbm %s1914_s9, 8192 }
  0x37   : > { %p1657_p0 = scmp.ne.s32.totalorder %s1914_s9, %s1656_s19  ;;  %p1658_p3 = pneg %p1920_p13 }
  0x38   : > { %s1661_s29 = scalar_lea.hbm %s2259_s0, 32768  ;;  %p1662_p9 = scmp.lt.u32.totalorder %s1914_s9, %s2259_s0 }
  0x39   : > { %p1659_p5 = pnand %p1658_p3, %p1657_p0  ;;  %p1663_p1 = scmp.lt.u32.totalorder %s1661_s29, %s1656_s19 }
  0x3a   : > { %p1665_p4 = scmp.lt.u32.totalorder %s1656_s19, %s1914_s9 }
  0x3b   : > { %p1660_p7 = pneg %p1659_p5  ;;  %p1664_p2 = por %p1663_p1, %p1662_p9 }
  0x3d   : > { %p1666_p6 = por %p1665_p4, %p1664_p2 }
  0x3f   : > { %p1667_p8 = pnand %p1666_p6, %p1660_p7 }
  0x41   : > { %1670 = shalt.err (!%p1667_p8)
}
  0x42   : > { %s1671_s26 = scalar_lea.vmem %s1916_s10, 8192  ;;  %s1777_s7 = smov [#allocation2]  }
  0x43   : > { %p1672_p12 = scmp.ne.s32.totalorder %s1916_s10, %s1671_s26  ;;  %s1676_s8 = sshll.u32 %s1777_s7, 4  ;;  %s1677_s8 = int_to_ptr.vmem [resolvable:$false] %s1676_s8 }
  0x44   : > { %s1678_s21 = scalar_lea.vmem %s1677_s8, 16384  ;;  %p1679_p5 = scmp.lt.s32.totalorder %s1916_s10, %s1677_s8 }
  0x45   : > { %p1674_p10 = pnand %p1672_p12, %p1658_p3  ;;  %p1680_p9 = scmp.lt.s32.totalorder %s1678_s21, %s1671_s26 }
  0x47   : > { %p1675_p0 = pneg %p1674_p10  ;;  %p1681_p1 = por %p1680_p9, %p1679_p5 }
  0x49   : > { %p1682_p2 = pnand %p1681_p1, %p1675_p0 }
  0x4b   : > { %1685 = shalt.err (!%p1682_p2)
}
  0x4c   : > { %s1778_s19 = smov 128   ;;  %s1779_s25 = smov 8  }
  0x4d   : > { %1451 = dma.hbm_to_vmem [thread:$0]  (!%p1920_p13), %s1914_s9, 8192, %s1916_s10, %s1924_s18, %s1778_s19, %s1778_s19, %s1779_s25  }
  0x4e   : > { %p2277_p3 = scmp.ne.s32.totalorder %s2271_s24, 0 }
  0x4f   : > { %s1955_s27 = sand.u32 (!%p2277_p3), 1, %s1756_s13   ;;  %p2278_p7 = scmp.ne.s32.totalorder (!%p2277_p3), %s2269_s22, 0 }
  0x50   : > { %201 = sbr.rel (%p2277_p3) target bundleno = 509 (0x1fd), region = 32  ;;  %s1312_s29 = sshll.u32 (!%p2277_p3), %s1955_s27, 9 }
  0x51   : > { %s204_s4 = scalar_lea.sflag (!%p2277_p3), [#allocation3], %s1955_s27  ;;  %s1961_s6 = scalar_lea.vmem (!%p2277_p3), [#allocation2], %s1312_s29 }
  0x57   : > { %1739 = dma.done.wait (%p2278_p7), %s204_s4, 8192  }
  0x58   : > { %1741 = vsyncadd (%p2278_p7), %s204_s4, 4294959104  ;;  %p2279_p13 = scmp.ne.s32.totalorder %s2267_s20, 0 }
  0x5a   : > { %1743 = dma.done.wait (%p2279_p13), [#allocation6], 2048  }
  0x5b   : > { %1745 = vsyncadd (%p2279_p13), [#allocation6], 4294965248  ;;  %v1780_v0 = vmov 0   ;;  %v1516_v1 = vld [vmem:[#allocation5] sm:$0xff]   ;;  %v1517_v2 = vld [vmem:[#allocation5 + $0x8] sm:$0xff]   ;;  %s2078_s24 = scalar_lea.vmem [#allocation7], %s1312_s29 }
  0x5c   : > { %762 = vmatprep.subr.bf16.mxu0 %v1780_v0  ;;  %1404 = vmatprep.subr.bf16.mxu1 %v1780_v0  ;;  %v1518_v3 = vld [vmem:[#allocation5 + $0x10] sm:$0xff]   ;;  %v1519_v4 = vld [vmem:[#allocation5 + $0x18] sm:$0xff]   ;;  %v1520_v5 = vld [vmem:[#allocation5 + $0x20] sm:$0xff]   ;;  %s1403_s9 = sshll.u32 %s1764_s15, 13  ;;  %s1194_s10 = sshll.u32 %s2078_s24, 4  ;;  %s2207_s10 = int_to_ptr.vmem [resolvable:$true] %s1194_s10 }
  0x5d   : > { %763 = vmatpush1.bf16.msra.mxu0 %v1516_v1  ;;  %1420 = vmatpush1.bf16.msra.mxu1 %v1516_v1  ;;  %v1534_v6 = vld [vmem:[%s1961_s6 + $0x4] ss:$8 sps:$4 sm:$0xff]   ;;  %v1522_v9 = vld [vmem:[#allocation5 + $0x30] sm:$0xff]   ;;  %v1523_v10 = vld [vmem:[#allocation5 + $0x38] sm:$0xff]   ;;  %s2205_s26 = scalar_lea.hbm %s2262_s3, %s1403_s9  ;;  %s1180_s15 = scalar_lea.sflag [#allocation4], %s1955_s27 }
  0x5e   : > { %764 = vmatprep.subr.bf16.mxu0 %v1780_v0  ;;  %1405 = vmatprep.subr.bf16.mxu1 %v1780_v0  ;;  %v1521_v7 = vld [vmem:[#allocation5 + $0x28] sm:$0xff]   ;;  %v1524_v11 = vld [vmem:[#allocation5 + $0x40] sm:$0xff]   ;;  %v1526_v13 = vld [vmem:[#allocation5 + $0x50] sm:$0xff]   ;;  %s1686_s7 = scalar_lea.vmem %s2207_s10, 8192  ;;  %s1781_s8 = smov [#allocation7]  }
  0x5f   : > { %v1537_v8 = vld [vmem:[%s1961_s6 + $0x104] ss:$8 sps:$4 sm:$0xff]   ;;  %794 = vmatprep.mubr.bf16.mxu0 %v1534_v6  ;;  %v1527_v14 = vld [vmem:[#allocation5 + $0x58] sm:$0xff]   ;;  %v1530_v17 = vld [vmem:[#allocation5 + $0x70] sm:$0xff]   ;;  %p1687_p4 = scmp.ne.s32.totalorder %s2207_s10, %s1686_s7  ;;  %s1690_s21 = sshll.u32 %s1781_s8, 4  ;;  %s1691_s21 = int_to_ptr.vmem [resolvable:$false] %s1690_s21 }
  0x60   : > { %922 = vmatprep.mubr.bf16.mxu1 %v1537_v8  ;;  %v1525_v12 = vld [vmem:[#allocation5 + $0x48] sm:$0xff]   ;;  %v1528_v15 = vld [vmem:[#allocation5 + $0x60] sm:$0xff]   ;;  %v1531_v18 = vld [vmem:[#allocation5 + $0x78] sm:$0xff]   ;;  %s1692_s19 = scalar_lea.vmem %s1691_s21, 16384  ;;  %p1693_p12 = scmp.lt.s32.totalorder %s2207_s10, %s1691_s21 }
  0x61   : > { %765 = vmatpush1.bf16.msra.mxu0 %v1517_v2  ;;  %1421 = vmatpush1.bf16.msra.mxu1 %v1517_v2  ;;  %v1529_v16 = vld [vmem:[#allocation5 + $0x68] sm:$0xff]   ;;  %v1538_v21 = vld [vmem:[%s1961_s6 + $0x14] ss:$8 sps:$4 sm:$0xff]   ;;  %v1542_v23 = vld [vmem:[%s1961_s6 + $0x10] ss:$8 sps:$4 sm:$0xff]   ;;  %p1688_p6 = pnand %p1687_p4, %p1899_p11  ;;  %p1694_p10 = scmp.lt.s32.totalorder %s1692_s19, %s1686_s7 }
  0x62   : > { %766 = vmatprep.subr.bf16.mxu0 %v1780_v0  ;;  %1406 = vmatprep.subr.bf16.mxu1 %v1780_v0  ;;  %v1532_v19 = vld [vmem:[%s1961_s6] ss:$8 sps:$4 sm:$0xff]   ;;  %v1540_v22 = vld [vmem:[%s1961_s6 + $0x114] ss:$8 sps:$4 sm:$0xff]   ;;  %v1543_v24 = vld [vmem:[%s1961_s6 + $0x110] ss:$8 sps:$4 sm:$0xff]  }
  0x63   : > { %v1535_v20 = vld [vmem:[%s1961_s6 + $0x100] ss:$8 sps:$4 sm:$0xff]   ;;  %v1544_v25 = vld [vmem:[%s1961_s6 + $0x24] ss:$8 sps:$4 sm:$0xff]   ;;  %v1550_v29 = vld [vmem:[%s1961_s6 + $0x34] ss:$8 sps:$4 sm:$0xff]   ;;  %p1689_p8 = pneg %p1688_p6  ;;  %p1695_p0 = por %p1694_p10, %p1693_p12 }
  0x64   : > { %v1546_v26 = vld [vmem:[%s1961_s6 + $0x124] ss:$8 sps:$4 sm:$0xff]   ;;  %v1548_v27 = vld [vmem:[%s1961_s6 + $0x20] ss:$8 sps:$4 sm:$0xff]   ;;  %v1552_v30 = vld [vmem:[%s1961_s6 + $0x134] ss:$8 sps:$4 sm:$0xff]  }
  0x65   : > { %767 = vmatpush1.bf16.msra.mxu0 %v1518_v3  ;;  %1422 = vmatpush1.bf16.msra.mxu1 %v1518_v3  ;;  %v1549_v28 = vld [vmem:[%s1961_s6 + $0x120] ss:$8 sps:$4 sm:$0xff]   ;;  %v1554_v31 = vld [vmem:[%s1961_s6 + $0x30] ss:$8 sps:$4 sm:$0xff]   ;;  %v1556_v33 = vld [vmem:[%s1961_s6 + $0x44] ss:$8 sps:$4 sm:$0xff]   ;;  %p1696_p5 = pnand %p1695_p0, %p1689_p8 }
  0x66   : > { %768 = vmatprep.subr.bf16.mxu0 %v1780_v0  ;;  %1407 = vmatprep.subr.bf16.mxu1 %v1780_v0  ;;  %v1555_v32 = vld [vmem:[%s1961_s6 + $0x130] ss:$8 sps:$4 sm:$0xff]   ;;  %v1558_v34 = vld [vmem:[%s1961_s6 + $0x144] ss:$8 sps:$4 sm:$0xff]   ;;  %v1560_v35 = vld [vmem:[%s1961_s6 + $0x40] ss:$8 sps:$4 sm:$0xff]  }
  0x67   : > { %v1561_v36 = vld [vmem:[%s1961_s6 + $0x140] ss:$8 sps:$4 sm:$0xff]   ;;  %v1562_v37 = vld [vmem:[%s1961_s6 + $0x54] ss:$8 sps:$4 sm:$0xff]   ;;  %v1566_v39 = vld [vmem:[%s1961_s6 + $0x50] ss:$8 sps:$4 sm:$0xff]  }
  0x68   : > { %v1564_v38 = vld [vmem:[%s1961_s6 + $0x154] ss:$8 sps:$4 sm:$0xff]   ;;  %v1567_v40 = vld [vmem:[%s1961_s6 + $0x150] ss:$8 sps:$4 sm:$0xff]   ;;  %v1568_v41 = vld [vmem:[%s1961_s6 + $0x64] ss:$8 sps:$4 sm:$0xff]  }
  0x69   : > { %769 = vmatpush1.bf16.msra.mxu0 %v1519_v4  ;;  %1423 = vmatpush1.bf16.msra.mxu1 %v1519_v4  ;;  %v1570_v42 = vld [vmem:[%s1961_s6 + $0x164] ss:$8 sps:$4 sm:$0xff]   ;;  %v1572_v43 = vld [vmem:[%s1961_s6 + $0x60] ss:$8 sps:$4 sm:$0xff]   ;;  %v1574_v45 = vld [vmem:[%s1961_s6 + $0x74] ss:$8 sps:$4 sm:$0xff]  }
  0x6a   : > { %770 = vmatprep.subr.bf16.mxu0 %v1780_v0  ;;  %1408 = vmatprep.subr.bf16.mxu1 %v1780_v0  ;;  %v1573_v44 = vld [vmem:[%s1961_s6 + $0x160] ss:$8 sps:$4 sm:$0xff]   ;;  %v1576_v46 = vld [vmem:[%s1961_s6 + $0x174] ss:$8 sps:$4 sm:$0xff]   ;;  %v1578_v47 = vld [vmem:[%s1961_s6 + $0x70] ss:$8 sps:$4 sm:$0xff]  }
  0x6b   : > { %v1579_v48 = vld [vmem:[%s1961_s6 + $0x170] ss:$8 sps:$4 sm:$0xff]   ;;  %v1580_v49 = vld [vmem:[%s1961_s6 + $0x84] ss:$8 sps:$4 sm:$0xff]   ;;  %v1584_v51 = vld [vmem:[%s1961_s6 + $0x80] ss:$8 sps:$4 sm:$0xff]  }
  0x6c   : > { %v1582_v50 = vld [vmem:[%s1961_s6 + $0x184] ss:$8 sps:$4 sm:$0xff]   ;;  %v1585_v52 = vld [vmem:[%s1961_s6 + $0x180] ss:$8 sps:$4 sm:$0xff]   ;;  %v1586_v53 = vld [vmem:[%s1961_s6 + $0x94] ss:$8 sps:$4 sm:$0xff]  }
  0x6d   : > { %771 = vmatpush1.bf16.msra.mxu0 %v1520_v5  ;;  %1424 = vmatpush1.bf16.msra.mxu1 %v1520_v5  ;;  %v1588_v54 = vld [vmem:[%s1961_s6 + $0x194] ss:$8 sps:$4 sm:$0xff]   ;;  %v1590_v55 = vld [vmem:[%s1961_s6 + $0x90] ss:$8 sps:$4 sm:$0xff]   ;;  %v1592_v57 = vld [vmem:[%s1961_s6 + $0xa4] ss:$8 sps:$4 sm:$0xff]  }
  0x6e   : > { %772 = vmatprep.subr.bf16.mxu0 %v1780_v0  ;;  %1409 = vmatprep.subr.bf16.mxu1 %v1780_v0  ;;  %v1591_v56 = vld [vmem:[%s1961_s6 + $0x190] ss:$8 sps:$4 sm:$0xff]   ;;  %v1594_v58 = vld [vmem:[%s1961_s6 + $0x1a4] ss:$8 sps:$4 sm:$0xff]   ;;  %v1596_v59 = vld [vmem:[%s1961_s6 + $0xa0] ss:$8 sps:$4 sm:$0xff]  }
  0x6f   : > { %v1597_v60 = vld [vmem:[%s1961_s6 + $0x1a0] ss:$8 sps:$4 sm:$0xff]   ;;  %v1598_v61 = vld [vmem:[%s1961_s6 + $0xb4] ss:$8 sps:$4 sm:$0xff]   ;;  %v1602_v63 = vld [vmem:[%s1961_s6 + $0xb0] ss:$8 sps:$4 sm:$0xff]  }
  0x70   : > { %v1600_v62 = vld [vmem:[%s1961_s6 + $0x1b4] ss:$8 sps:$4 sm:$0xff]   ;;  %v1604_v1 = vld [vmem:[%s1961_s6 + $0xc4] ss:$8 sps:$4 sm:$0xff]   ;;  %v1608_v3 = vld [vmem:[%s1961_s6 + $0xc0] ss:$8 sps:$4 sm:$0xff]  }
  0x71   : > { %773 = vmatpush1.bf16.msra.mxu0 %v1521_v7  ;;  %1425 = vmatpush1.bf16.msra.mxu1 %v1521_v7  ;;  %v1606_v2 = vld [vmem:[%s1961_s6 + $0x1c4] ss:$8 sps:$4 sm:$0xff]   ;;  %v1609_v4 = vld [vmem:[%s1961_s6 + $0x1c0] ss:$8 sps:$4 sm:$0xff]   ;;  %v1610_v5 = vld [vmem:[%s1961_s6 + $0xd4] ss:$8 sps:$4 sm:$0xff]  }
  0x72   : > { %774 = vmatprep.subr.bf16.mxu0 %v1780_v0  ;;  %1410 = vmatprep.subr.bf16.mxu1 %v1780_v0  ;;  %v1612_v6 = vld [vmem:[%s1961_s6 + $0x1d4] ss:$8 sps:$4 sm:$0xff]   ;;  %v1614_v7 = vld [vmem:[%s1961_s6 + $0xd0] ss:$8 sps:$4 sm:$0xff]  }
  0x73   : > { %v1615_v8 = vld [vmem:[%s1961_s6 + $0x1d0] ss:$8 sps:$4 sm:$0xff]  }
  0x75   : > { %775 = vmatpush1.bf16.msra.mxu0 %v1522_v9  ;;  %1426 = vmatpush1.bf16.msra.mxu1 %v1522_v9  ;;  %v1616_v9 = vld [vmem:[%s1961_s6 + $0xe4] ss:$8 sps:$4 sm:$0xff]  }
  0x76   : > { %776 = vmatprep.subr.bf16.mxu0 %v1780_v0  ;;  %1411 = vmatprep.subr.bf16.mxu1 %v1780_v0 }
  0x79   : > { %777 = vmatpush1.bf16.msra.mxu0 %v1523_v10  ;;  %1427 = vmatpush1.bf16.msra.mxu1 %v1523_v10  ;;  %v1618_v10 = vld [vmem:[%s1961_s6 + $0x1e4] ss:$8 sps:$4 sm:$0xff]  }
  0x7a   : > { %778 = vmatprep.subr.bf16.mxu0 %v1780_v0  ;;  %1412 = vmatprep.subr.bf16.mxu1 %v1780_v0 }
  0x7d   : > { %779 = vmatpush1.bf16.msra.mxu0 %v1524_v11  ;;  %1428 = vmatpush1.bf16.msra.mxu1 %v1524_v11  ;;  %v1620_v11 = vld [vmem:[%s1961_s6 + $0xe0] ss:$8 sps:$4 sm:$0xff]  }
  0x7e   : > { %780 = vmatprep.subr.bf16.mxu0 %v1780_v0  ;;  %1413 = vmatprep.subr.bf16.mxu1 %v1780_v0 }
  0x81   : > { %781 = vmatpush1.bf16.msra.mxu0 %v1525_v12  ;;  %1429 = vmatpush1.bf16.msra.mxu1 %v1525_v12  ;;  %v1621_v12 = vld [vmem:[%s1961_s6 + $0x1e0] ss:$8 sps:$4 sm:$0xff]  }
  0x82   : > { %782 = vmatprep.subr.bf16.mxu0 %v1780_v0  ;;  %1414 = vmatprep.subr.bf16.mxu1 %v1780_v0 }
  0x85   : > { %783 = vmatpush1.bf16.msra.mxu0 %v1526_v13  ;;  %1430 = vmatpush1.bf16.msra.mxu1 %v1526_v13  ;;  %v1622_v13 = vld [vmem:[%s1961_s6 + $0xf4] ss:$8 sps:$4 sm:$0xff]  }
  0x86   : > { %784 = vmatprep.subr.bf16.mxu0 %v1780_v0  ;;  %1415 = vmatprep.subr.bf16.mxu1 %v1780_v0 }
  0x89   : > { %785 = vmatpush1.bf16.msra.mxu0 %v1527_v14  ;;  %1431 = vmatpush1.bf16.msra.mxu1 %v1527_v14  ;;  %v1624_v14 = vld [vmem:[%s1961_s6 + $0x1f4] ss:$8 sps:$4 sm:$0xff]  }
  0x8a   : > { %786 = vmatprep.subr.bf16.mxu0 %v1780_v0  ;;  %1416 = vmatprep.subr.bf16.mxu1 %v1780_v0 }
  0x8d   : > { %787 = vmatpush1.bf16.msra.mxu0 %v1528_v15  ;;  %1432 = vmatpush1.bf16.msra.mxu1 %v1528_v15  ;;  %v1626_v15 = vld [vmem:[%s1961_s6 + $0xf0] ss:$8 sps:$4 sm:$0xff]  }
  0x8e   : > { %788 = vmatprep.subr.bf16.mxu0 %v1780_v0  ;;  %1417 = vmatprep.subr.bf16.mxu1 %v1780_v0 }
  0x91   : > { %789 = vmatpush1.bf16.msra.mxu0 %v1529_v16  ;;  %1433 = vmatpush1.bf16.msra.mxu1 %v1529_v16  ;;  %v1627_v16 = vld [vmem:[%s1961_s6 + $0x1f0] ss:$8 sps:$4 sm:$0xff]  }
  0x92   : > { %790 = vmatprep.subr.bf16.mxu0 %v1780_v0  ;;  %1418 = vmatprep.subr.bf16.mxu1 %v1780_v0 }
  0x95   : > { %791 = vmatpush1.bf16.msra.mxu0 %v1530_v17  ;;  %1434 = vmatpush1.bf16.msra.mxu1 %v1530_v17  ;;  %v2070_v17 = vld [vmem:[%s2261_s2] ss:$0 sm:$0xff] }
  0x96   : > { %792 = vmatprep.subr.bf16.mxu0 %v1780_v0  ;;  %1419 = vmatprep.subr.bf16.mxu1 %v1780_v0  ;;  %v1603_v0 = vld [vmem:[%s1961_s6 + $0x1b0] ss:$8 sps:$4 sm:$0xff]  }
  0x99   : > { %793 = vmatpush1.bf16.msra.mxu0 %v1531_v18  ;;  %1435 = vmatpush1.bf16.msra.mxu1 %v1531_v18 }
  0x9c   : > { %795 = vmatmul.mubr.bf16.vlgmr.msra.gmra.mrb[0].mxu0 %v1532_v19  ;;  %923 = vmatmul.mubr.bf16.vlgmr.msra.gmra.mrb[0].mxu1 %v1535_v20 }
  0x9d   : > { %802 = vmatprep.mubr.bf16.mxu0 %v1538_v21  ;;  %930 = vmatprep.mubr.bf16.mxu1 %v1540_v22 }
  0xa4   : > { %803 = vmatmul.mubr.bf16.gmra.mrb[4].mxu0 %v1542_v23  ;;  %931 = vmatmul.mubr.bf16.gmra.mrb[4].mxu1 %v1543_v24 }
  0xa5   : > { %810 = vmatprep.mubr.bf16.mxu0 %v1544_v25  ;;  %938 = vmatprep.mubr.bf16.mxu1 %v1546_v26 }
  0xac   : > { %811 = vmatmul.mubr.bf16.gmra.mrb[8].mxu0 %v1548_v27  ;;  %939 = vmatmul.mubr.bf16.gmra.mrb[8].mxu1 %v1549_v28 }
  0xad   : > { %818 = vmatprep.mubr.bf16.mxu0 %v1550_v29  ;;  %946 = vmatprep.mubr.bf16.mxu1 %v1552_v30 }
  0xb4   : > { %819 = vmatmul.mubr.bf16.gmra.mrb[12].mxu0 %v1554_v31  ;;  %947 = vmatmul.mubr.bf16.gmra.mrb[12].mxu1 %v1555_v32 }
  0xb5   : > { %826 = vmatprep.mubr.bf16.mxu0 %v1556_v33  ;;  %954 = vmatprep.mubr.bf16.mxu1 %v1558_v34 }
  0xbc   : > { %827 = vmatmul.mubr.bf16.gmra.mrb[16].mxu0 %v1560_v35  ;;  %955 = vmatmul.mubr.bf16.gmra.mrb[16].mxu1 %v1561_v36 }
  0xbd   : > { %834 = vmatprep.mubr.bf16.mxu0 %v1562_v37  ;;  %962 = vmatprep.mubr.bf16.mxu1 %v1564_v38 }
  0xc4   : > { %835 = vmatmul.mubr.bf16.gmra.mrb[20].mxu0 %v1566_v39  ;;  %963 = vmatmul.mubr.bf16.gmra.mrb[20].mxu1 %v1567_v40 }
  0xc5   : > { %842 = vmatprep.mubr.bf16.mxu0 %v1568_v41  ;;  %970 = vmatprep.mubr.bf16.mxu1 %v1570_v42 }
  0xcc   : > { %843 = vmatmul.mubr.bf16.gmra.mrb[24].mxu0 %v1572_v43  ;;  %971 = vmatmul.mubr.bf16.gmra.mrb[24].mxu1 %v1573_v44 }
  0xcd   : > { %850 = vmatprep.mubr.bf16.mxu0 %v1574_v45  ;;  %978 = vmatprep.mubr.bf16.mxu1 %v1576_v46 }
  0xd4   : > { %851 = vmatmul.mubr.bf16.gmra.mrb[28].mxu0 %v1578_v47  ;;  %979 = vmatmul.mubr.bf16.gmra.mrb[28].mxu1 %v1579_v48 }
  0xd5   : > { %858 = vmatprep.mubr.bf16.mxu0 %v1580_v49  ;;  %986 = vmatprep.mubr.bf16.mxu1 %v1582_v50 }
  0xdc   : > { %859 = vmatmul.mubr.bf16.gmra.mrb[32].mxu0 %v1584_v51  ;;  %987 = vmatmul.mubr.bf16.gmra.mrb[32].mxu1 %v1585_v52 }
  0xdd   : > { %866 = vmatprep.mubr.bf16.mxu0 %v1586_v53  ;;  %994 = vmatprep.mubr.bf16.mxu1 %v1588_v54 }
  0xe4   : > { %867 = vmatmul.mubr.bf16.gmra.mrb[36].mxu0 %v1590_v55  ;;  %995 = vmatmul.mubr.bf16.gmra.mrb[36].mxu1 %v1591_v56 }
  0xe5   : > { %874 = vmatprep.mubr.bf16.mxu0 %v1592_v57  ;;  %1002 = vmatprep.mubr.bf16.mxu1 %v1594_v58 }
  0xec   : > { %875 = vmatmul.mubr.bf16.gmra.mrb[40].mxu0 %v1596_v59  ;;  %1003 = vmatmul.mubr.bf16.gmra.mrb[40].mxu1 %v1597_v60 }
  0xed   : > { %882 = vmatprep.mubr.bf16.mxu0 %v1598_v61  ;;  %1010 = vmatprep.mubr.bf16.mxu1 %v1600_v62 }
  0xf4   : > { %883 = vmatmul.mubr.bf16.gmra.mrb[44].mxu0 %v1602_v63  ;;  %1011 = vmatmul.mubr.bf16.gmra.mrb[44].mxu1 %v1603_v0 }
  0xf5   : > { %890 = vmatprep.mubr.bf16.mxu0 %v1604_v1  ;;  %1018 = vmatprep.mubr.bf16.mxu1 %v1606_v2 }
  0xfc   : > { %891 = vmatmul.mubr.bf16.gmra.mrb[48].mxu0 %v1608_v3  ;;  %1019 = vmatmul.mubr.bf16.gmra.mrb[48].mxu1 %v1609_v4 }
  0xfd   : > { %898 = vmatprep.mubr.bf16.mxu0 %v1610_v5  ;;  %1026 = vmatprep.mubr.bf16.mxu1 %v1612_v6 }
 0x104   : > { %899 = vmatmul.mubr.bf16.gmra.mrb[52].mxu0 %v1614_v7  ;;  %1027 = vmatmul.mubr.bf16.gmra.mrb[52].mxu1 %v1615_v8 }
 0x105   : > { %906 = vmatprep.mubr.bf16.mxu0 %v1616_v9  ;;  %1034 = vmatprep.mubr.bf16.mxu1 %v1618_v10 }
 0x10c   : > { %907 = vmatmul.mubr.bf16.gmra.mrb[56].mxu0 %v1620_v11  ;;  %1035 = vmatmul.mubr.bf16.gmra.mrb[56].mxu1 %v1621_v12 }
 0x10d   : > { %914 = vmatprep.mubr.bf16.mxu0 %v1622_v13  ;;  %1042 = vmatprep.mubr.bf16.mxu1 %v1624_v14 }
 0x114   : > { %915 = vmatmul.mubr.bf16.gmra.mrb[60].mxu0 %v1626_v15  ;;  %1043 = vmatmul.mubr.bf16.gmra.mrb[60].mxu1 %v1627_v16 }
 0x16f   : > { %v796_v18 = vpop.f32.mrb[0].mxu0  ;;  %v924_v19 = vpop.f32.mrb[0].mxu1 }
 0x170   : > { %v797_v20 = vadd.f32 %v2070_v17, %v796_v18  ;;  %v925_v21 = vadd.f32 %v2070_v17, %v924_v19  ;;  %v798_v22 = vpop.f32.mrb[1].mxu0  ;;  %v926_v23 = vpop.f32.mrb[1].mxu1 }
 0x171   : > { %v799_v24 = vpop.f32.mrb[2].mxu0  ;;  %v927_v25 = vpop.f32.mrb[2].mxu1 }
 0x172   : > { %v1051_v26 = vmax.f32 %v797_v20, 0.0  ;;  %v1083_v27 = vmax.f32 %v925_v21, 0.0  ;;  %v800_v28 = vadd.f32 %v2070_v17, %v799_v24  ;;  %v928_v29 = vadd.f32 %v2070_v17, %v927_v25  ;;  %v801_v30 = vpop.f32.mrb[3].mxu0  ;;  %v929_v31 = vpop.f32.mrb[3].mxu1 }
 0x174   : > { %1115 = vst [vmem:[%s2078_s24] sm:$0xff] %v1051_v26  ;;  %1147 = vst [vmem:[%s2078_s24 + $0x100] sm:$0xff] %v1083_v27  ;;  %v1052_v32 = vmax.f32 %v800_v28, 0.0  ;;  %v1084_v33 = vmax.f32 %v928_v29, 0.0 }
 0x176   : > { %1116 = vst [vmem:[%s2078_s24 + $0x8] sm:$0xff] %v1052_v32  ;;  %1148 = vst [vmem:[%s2078_s24 + $0x108] sm:$0xff] %v1084_v33 }
 0x177   : > { %v804_v34 = vpop.f32.mrb[4].mxu0  ;;  %v932_v35 = vpop.f32.mrb[4].mxu1 }
 0x178   : > { %v805_v36 = vadd.f32 %v2070_v17, %v804_v34  ;;  %v933_v37 = vadd.f32 %v2070_v17, %v932_v35  ;;  %v806_v38 = vpop.f32.mrb[5].mxu0  ;;  %v934_v39 = vpop.f32.mrb[5].mxu1 }
 0x179   : > { %v807_v40 = vpop.f32.mrb[6].mxu0  ;;  %v935_v41 = vpop.f32.mrb[6].mxu1 }
 0x17a   : > { %v1053_v42 = vmax.f32 %v805_v36, 0.0  ;;  %v1085_v43 = vmax.f32 %v933_v37, 0.0  ;;  %v808_v44 = vadd.f32 %v2070_v17, %v807_v40  ;;  %v936_v45 = vadd.f32 %v2070_v17, %v935_v41  ;;  %v809_v46 = vpop.f32.mrb[7].mxu0  ;;  %v937_v47 = vpop.f32.mrb[7].mxu1 }
 0x17c   : > { %1117 = vst [vmem:[%s2078_s24 + $0x10] sm:$0xff] %v1053_v42  ;;  %1149 = vst [vmem:[%s2078_s24 + $0x110] sm:$0xff] %v1085_v43  ;;  %v1054_v48 = vmax.f32 %v808_v44, 0.0  ;;  %v1086_v49 = vmax.f32 %v936_v45, 0.0 }
 0x17e   : > { %1118 = vst [vmem:[%s2078_s24 + $0x18] sm:$0xff] %v1054_v48  ;;  %1150 = vst [vmem:[%s2078_s24 + $0x118] sm:$0xff] %v1086_v49 }
 0x17f   : > { %v812_v50 = vpop.f32.mrb[8].mxu0  ;;  %v940_v51 = vpop.f32.mrb[8].mxu1 }
 0x180   : > { %v813_v52 = vadd.f32 %v2070_v17, %v812_v50  ;;  %v941_v53 = vadd.f32 %v2070_v17, %v940_v51  ;;  %v814_v54 = vpop.f32.mrb[9].mxu0  ;;  %v942_v55 = vpop.f32.mrb[9].mxu1 }
 0x181   : > { %v815_v56 = vpop.f32.mrb[10].mxu0  ;;  %v943_v57 = vpop.f32.mrb[10].mxu1 }
 0x182   : > { %v1055_v58 = vmax.f32 %v813_v52, 0.0  ;;  %v1087_v59 = vmax.f32 %v941_v53, 0.0  ;;  %v816_v60 = vadd.f32 %v2070_v17, %v815_v56  ;;  %v944_v61 = vadd.f32 %v2070_v17, %v943_v57  ;;  %v817_v62 = vpop.f32.mrb[11].mxu0  ;;  %v945_v63 = vpop.f32.mrb[11].mxu1 }
 0x184   : > { %1119 = vst [vmem:[%s2078_s24 + $0x20] sm:$0xff] %v1055_v58  ;;  %1151 = vst [vmem:[%s2078_s24 + $0x120] sm:$0xff] %v1087_v59  ;;  %v1056_v0 = vmax.f32 %v816_v60, 0.0  ;;  %v1088_v1 = vmax.f32 %v944_v61, 0.0 }
 0x186   : > { %1120 = vst [vmem:[%s2078_s24 + $0x28] sm:$0xff] %v1056_v0  ;;  %1152 = vst [vmem:[%s2078_s24 + $0x128] sm:$0xff] %v1088_v1 }
 0x187   : > { %v820_v2 = vpop.f32.mrb[12].mxu0  ;;  %v948_v3 = vpop.f32.mrb[12].mxu1 }
 0x188   : > { %v821_v4 = vadd.f32 %v2070_v17, %v820_v2  ;;  %v949_v5 = vadd.f32 %v2070_v17, %v948_v3  ;;  %v822_v6 = vpop.f32.mrb[13].mxu0  ;;  %v950_v7 = vpop.f32.mrb[13].mxu1 }
 0x189   : > { %v823_v8 = vpop.f32.mrb[14].mxu0  ;;  %v951_v9 = vpop.f32.mrb[14].mxu1 }
 0x18a   : > { %v1057_v10 = vmax.f32 %v821_v4, 0.0  ;;  %v1089_v11 = vmax.f32 %v949_v5, 0.0  ;;  %v824_v12 = vadd.f32 %v2070_v17, %v823_v8  ;;  %v952_v13 = vadd.f32 %v2070_v17, %v951_v9  ;;  %v825_v14 = vpop.f32.mrb[15].mxu0  ;;  %v953_v15 = vpop.f32.mrb[15].mxu1 }
 0x18c   : > { %1121 = vst [vmem:[%s2078_s24 + $0x30] sm:$0xff] %v1057_v10  ;;  %1153 = vst [vmem:[%s2078_s24 + $0x130] sm:$0xff] %v1089_v11  ;;  %v1058_v16 = vmax.f32 %v824_v12, 0.0  ;;  %v1090_v18 = vmax.f32 %v952_v13, 0.0 }
 0x18e   : > { %1122 = vst [vmem:[%s2078_s24 + $0x38] sm:$0xff] %v1058_v16  ;;  %1154 = vst [vmem:[%s2078_s24 + $0x138] sm:$0xff] %v1090_v18 }
 0x18f   : > { %v828_v19 = vpop.f32.mrb[16].mxu0  ;;  %v956_v20 = vpop.f32.mrb[16].mxu1 }
 0x190   : > { %v829_v21 = vadd.f32 %v2070_v17, %v828_v19  ;;  %v957_v22 = vadd.f32 %v2070_v17, %v956_v20  ;;  %v830_v23 = vpop.f32.mrb[17].mxu0  ;;  %v958_v24 = vpop.f32.mrb[17].mxu1 }
 0x191   : > { %v831_v25 = vpop.f32.mrb[18].mxu0  ;;  %v959_v26 = vpop.f32.mrb[18].mxu1 }
 0x192   : > { %v1059_v27 = vmax.f32 %v829_v21, 0.0  ;;  %v1091_v28 = vmax.f32 %v957_v22, 0.0  ;;  %v832_v29 = vadd.f32 %v2070_v17, %v831_v25  ;;  %v960_v30 = vadd.f32 %v2070_v17, %v959_v26  ;;  %v833_v31 = vpop.f32.mrb[19].mxu0  ;;  %v961_v32 = vpop.f32.mrb[19].mxu1 }
 0x194   : > { %1123 = vst [vmem:[%s2078_s24 + $0x40] sm:$0xff] %v1059_v27  ;;  %1155 = vst [vmem:[%s2078_s24 + $0x140] sm:$0xff] %v1091_v28  ;;  %v1060_v33 = vmax.f32 %v832_v29, 0.0  ;;  %v1092_v34 = vmax.f32 %v960_v30, 0.0 }
 0x196   : > { %1124 = vst [vmem:[%s2078_s24 + $0x48] sm:$0xff] %v1060_v33  ;;  %1156 = vst [vmem:[%s2078_s24 + $0x148] sm:$0xff] %v1092_v34 }
 0x197   : > { %v836_v35 = vpop.f32.mrb[20].mxu0  ;;  %v964_v36 = vpop.f32.mrb[20].mxu1 }
 0x198   : > { %v837_v37 = vadd.f32 %v2070_v17, %v836_v35  ;;  %v965_v38 = vadd.f32 %v2070_v17, %v964_v36  ;;  %v838_v39 = vpop.f32.mrb[21].mxu0  ;;  %v966_v40 = vpop.f32.mrb[21].mxu1 }
 0x199   : > { %v839_v41 = vpop.f32.mrb[22].mxu0  ;;  %v967_v42 = vpop.f32.mrb[22].mxu1 }
 0x19a   : > { %v1061_v43 = vmax.f32 %v837_v37, 0.0  ;;  %v1093_v44 = vmax.f32 %v965_v38, 0.0  ;;  %v840_v45 = vadd.f32 %v2070_v17, %v839_v41  ;;  %v968_v46 = vadd.f32 %v2070_v17, %v967_v42  ;;  %v841_v47 = vpop.f32.mrb[23].mxu0  ;;  %v969_v48 = vpop.f32.mrb[23].mxu1 }
 0x19c   : > { %1125 = vst [vmem:[%s2078_s24 + $0x50] sm:$0xff] %v1061_v43  ;;  %1157 = vst [vmem:[%s2078_s24 + $0x150] sm:$0xff] %v1093_v44  ;;  %v1062_v49 = vmax.f32 %v840_v45, 0.0  ;;  %v1094_v50 = vmax.f32 %v968_v46, 0.0 }
 0x19e   : > { %1126 = vst [vmem:[%s2078_s24 + $0x58] sm:$0xff] %v1062_v49  ;;  %1158 = vst [vmem:[%s2078_s24 + $0x158] sm:$0xff] %v1094_v50 }
 0x19f   : > { %v844_v51 = vpop.f32.mrb[24].mxu0  ;;  %v972_v52 = vpop.f32.mrb[24].mxu1 }
 0x1a0   : > { %v845_v53 = vadd.f32 %v2070_v17, %v844_v51  ;;  %v973_v54 = vadd.f32 %v2070_v17, %v972_v52  ;;  %v846_v55 = vpop.f32.mrb[25].mxu0  ;;  %v974_v56 = vpop.f32.mrb[25].mxu1 }
 0x1a1   : > { %v847_v57 = vpop.f32.mrb[26].mxu0  ;;  %v975_v58 = vpop.f32.mrb[26].mxu1 }
 0x1a2   : > { %v1063_v59 = vmax.f32 %v845_v53, 0.0  ;;  %v1095_v60 = vmax.f32 %v973_v54, 0.0  ;;  %v848_v61 = vadd.f32 %v2070_v17, %v847_v57  ;;  %v976_v62 = vadd.f32 %v2070_v17, %v975_v58  ;;  %v849_v63 = vpop.f32.mrb[27].mxu0  ;;  %v977_v0 = vpop.f32.mrb[27].mxu1 }
 0x1a4   : > { %1127 = vst [vmem:[%s2078_s24 + $0x60] sm:$0xff] %v1063_v59  ;;  %1159 = vst [vmem:[%s2078_s24 + $0x160] sm:$0xff] %v1095_v60  ;;  %v1064_v1 = vmax.f32 %v848_v61, 0.0  ;;  %v1096_v2 = vmax.f32 %v976_v62, 0.0 }
 0x1a6   : > { %1128 = vst [vmem:[%s2078_s24 + $0x68] sm:$0xff] %v1064_v1  ;;  %1160 = vst [vmem:[%s2078_s24 + $0x168] sm:$0xff] %v1096_v2 }
 0x1a7   : > { %v852_v3 = vpop.f32.mrb[28].mxu0  ;;  %v980_v4 = vpop.f32.mrb[28].mxu1 }
 0x1a8   : > { %v853_v5 = vadd.f32 %v2070_v17, %v852_v3  ;;  %v981_v6 = vadd.f32 %v2070_v17, %v980_v4  ;;  %v854_v7 = vpop.f32.mrb[29].mxu0  ;;  %v982_v8 = vpop.f32.mrb[29].mxu1 }
 0x1a9   : > { %v855_v9 = vpop.f32.mrb[30].mxu0  ;;  %v983_v10 = vpop.f32.mrb[30].mxu1 }
 0x1aa   : > { %v1065_v11 = vmax.f32 %v853_v5, 0.0  ;;  %v1097_v12 = vmax.f32 %v981_v6, 0.0  ;;  %v856_v13 = vadd.f32 %v2070_v17, %v855_v9  ;;  %v984_v14 = vadd.f32 %v2070_v17, %v983_v10  ;;  %v857_v15 = vpop.f32.mrb[31].mxu0  ;;  %v985_v16 = vpop.f32.mrb[31].mxu1 }
 0x1ac   : > { %1129 = vst [vmem:[%s2078_s24 + $0x70] sm:$0xff] %v1065_v11  ;;  %1161 = vst [vmem:[%s2078_s24 + $0x170] sm:$0xff] %v1097_v12  ;;  %v1066_v18 = vmax.f32 %v856_v13, 0.0  ;;  %v1098_v19 = vmax.f32 %v984_v14, 0.0 }
 0x1ae   : > { %1130 = vst [vmem:[%s2078_s24 + $0x78] sm:$0xff] %v1066_v18  ;;  %1162 = vst [vmem:[%s2078_s24 + $0x178] sm:$0xff] %v1098_v19 }
 0x1af   : > { %v860_v20 = vpop.f32.mrb[32].mxu0  ;;  %v988_v21 = vpop.f32.mrb[32].mxu1 }
 0x1b0   : > { %v861_v22 = vadd.f32 %v2070_v17, %v860_v20  ;;  %v989_v23 = vadd.f32 %v2070_v17, %v988_v21  ;;  %v862_v24 = vpop.f32.mrb[33].mxu0  ;;  %v990_v25 = vpop.f32.mrb[33].mxu1 }
 0x1b1   : > { %v863_v26 = vpop.f32.mrb[34].mxu0  ;;  %v991_v27 = vpop.f32.mrb[34].mxu1 }
 0x1b2   : > { %v1067_v28 = vmax.f32 %v861_v22, 0.0  ;;  %v1099_v29 = vmax.f32 %v989_v23, 0.0  ;;  %v864_v30 = vadd.f32 %v2070_v17, %v863_v26  ;;  %v992_v31 = vadd.f32 %v2070_v17, %v991_v27  ;;  %v865_v32 = vpop.f32.mrb[35].mxu0  ;;  %v993_v33 = vpop.f32.mrb[35].mxu1 }
 0x1b4   : > { %1131 = vst [vmem:[%s2078_s24 + $0x80] sm:$0xff] %v1067_v28  ;;  %1163 = vst [vmem:[%s2078_s24 + $0x180] sm:$0xff] %v1099_v29  ;;  %v1068_v34 = vmax.f32 %v864_v30, 0.0  ;;  %v1100_v35 = vmax.f32 %v992_v31, 0.0 }
 0x1b6   : > { %1132 = vst [vmem:[%s2078_s24 + $0x88] sm:$0xff] %v1068_v34  ;;  %1164 = vst [vmem:[%s2078_s24 + $0x188] sm:$0xff] %v1100_v35 }
 0x1b7   : > { %v868_v36 = vpop.f32.mrb[36].mxu0  ;;  %v996_v37 = vpop.f32.mrb[36].mxu1 }
 0x1b8   : > { %v869_v38 = vadd.f32 %v2070_v17, %v868_v36  ;;  %v997_v39 = vadd.f32 %v2070_v17, %v996_v37  ;;  %v870_v40 = vpop.f32.mrb[37].mxu0  ;;  %v998_v41 = vpop.f32.mrb[37].mxu1 }
 0x1b9   : > { %v871_v42 = vpop.f32.mrb[38].mxu0  ;;  %v999_v43 = vpop.f32.mrb[38].mxu1 }
 0x1ba   : > { %v1069_v44 = vmax.f32 %v869_v38, 0.0  ;;  %v1101_v45 = vmax.f32 %v997_v39, 0.0  ;;  %v872_v46 = vadd.f32 %v2070_v17, %v871_v42  ;;  %v1000_v47 = vadd.f32 %v2070_v17, %v999_v43  ;;  %v873_v48 = vpop.f32.mrb[39].mxu0  ;;  %v1001_v49 = vpop.f32.mrb[39].mxu1 }
 0x1bc   : > { %1133 = vst [vmem:[%s2078_s24 + $0x90] sm:$0xff] %v1069_v44  ;;  %1165 = vst [vmem:[%s2078_s24 + $0x190] sm:$0xff] %v1101_v45  ;;  %v1070_v50 = vmax.f32 %v872_v46, 0.0  ;;  %v1102_v51 = vmax.f32 %v1000_v47, 0.0 }
 0x1be   : > { %1134 = vst [vmem:[%s2078_s24 + $0x98] sm:$0xff] %v1070_v50  ;;  %1166 = vst [vmem:[%s2078_s24 + $0x198] sm:$0xff] %v1102_v51 }
 0x1bf   : > { %v876_v52 = vpop.f32.mrb[40].mxu0  ;;  %v1004_v53 = vpop.f32.mrb[40].mxu1 }
 0x1c0   : > { %v877_v54 = vadd.f32 %v2070_v17, %v876_v52  ;;  %v1005_v55 = vadd.f32 %v2070_v17, %v1004_v53  ;;  %v878_v56 = vpop.f32.mrb[41].mxu0  ;;  %v1006_v57 = vpop.f32.mrb[41].mxu1 }
 0x1c1   : > { %v879_v58 = vpop.f32.mrb[42].mxu0  ;;  %v1007_v59 = vpop.f32.mrb[42].mxu1 }
 0x1c2   : > { %v1071_v60 = vmax.f32 %v877_v54, 0.0  ;;  %v1103_v61 = vmax.f32 %v1005_v55, 0.0  ;;  %v880_v62 = vadd.f32 %v2070_v17, %v879_v58  ;;  %v1008_v63 = vadd.f32 %v2070_v17, %v1007_v59  ;;  %v881_v0 = vpop.f32.mrb[43].mxu0  ;;  %v1009_v1 = vpop.f32.mrb[43].mxu1 }
 0x1c4   : > { %1135 = vst [vmem:[%s2078_s24 + $0xa0] sm:$0xff] %v1071_v60  ;;  %1167 = vst [vmem:[%s2078_s24 + $0x1a0] sm:$0xff] %v1103_v61  ;;  %v1072_v2 = vmax.f32 %v880_v62, 0.0  ;;  %v1104_v3 = vmax.f32 %v1008_v63, 0.0 }
 0x1c6   : > { %1136 = vst [vmem:[%s2078_s24 + $0xa8] sm:$0xff] %v1072_v2  ;;  %1168 = vst [vmem:[%s2078_s24 + $0x1a8] sm:$0xff] %v1104_v3 }
 0x1c7   : > { %v884_v4 = vpop.f32.mrb[44].mxu0  ;;  %v1012_v5 = vpop.f32.mrb[44].mxu1 }
 0x1c8   : > { %v885_v6 = vadd.f32 %v2070_v17, %v884_v4  ;;  %v1013_v7 = vadd.f32 %v2070_v17, %v1012_v5  ;;  %v886_v8 = vpop.f32.mrb[45].mxu0  ;;  %v1014_v9 = vpop.f32.mrb[45].mxu1 }
 0x1c9   : > { %v887_v10 = vpop.f32.mrb[46].mxu0  ;;  %v1015_v11 = vpop.f32.mrb[46].mxu1 }
 0x1ca   : > { %v1073_v12 = vmax.f32 %v885_v6, 0.0  ;;  %v1105_v13 = vmax.f32 %v1013_v7, 0.0  ;;  %v888_v14 = vadd.f32 %v2070_v17, %v887_v10  ;;  %v1016_v15 = vadd.f32 %v2070_v17, %v1015_v11  ;;  %v889_v16 = vpop.f32.mrb[47].mxu0  ;;  %v1017_v18 = vpop.f32.mrb[47].mxu1 }
 0x1cc   : > { %1137 = vst [vmem:[%s2078_s24 + $0xb0] sm:$0xff] %v1073_v12  ;;  %1169 = vst [vmem:[%s2078_s24 + $0x1b0] sm:$0xff] %v1105_v13  ;;  %v1074_v19 = vmax.f32 %v888_v14, 0.0  ;;  %v1106_v20 = vmax.f32 %v1016_v15, 0.0 }
 0x1ce   : > { %1138 = vst [vmem:[%s2078_s24 + $0xb8] sm:$0xff] %v1074_v19  ;;  %1170 = vst [vmem:[%s2078_s24 + $0x1b8] sm:$0xff] %v1106_v20 }
 0x1cf   : > { %v892_v21 = vpop.f32.mrb[48].mxu0  ;;  %v1020_v22 = vpop.f32.mrb[48].mxu1 }
 0x1d0   : > { %v893_v23 = vadd.f32 %v2070_v17, %v892_v21  ;;  %v1021_v24 = vadd.f32 %v2070_v17, %v1020_v22  ;;  %v894_v25 = vpop.f32.mrb[49].mxu0  ;;  %v1022_v26 = vpop.f32.mrb[49].mxu1 }
 0x1d1   : > { %v895_v27 = vpop.f32.mrb[50].mxu0  ;;  %v1023_v28 = vpop.f32.mrb[50].mxu1 }
 0x1d2   : > { %v1075_v29 = vmax.f32 %v893_v23, 0.0  ;;  %v1107_v30 = vmax.f32 %v1021_v24, 0.0  ;;  %v896_v31 = vadd.f32 %v2070_v17, %v895_v27  ;;  %v1024_v32 = vadd.f32 %v2070_v17, %v1023_v28  ;;  %v897_v33 = vpop.f32.mrb[51].mxu0  ;;  %v1025_v34 = vpop.f32.mrb[51].mxu1 }
 0x1d4   : > { %1139 = vst [vmem:[%s2078_s24 + $0xc0] sm:$0xff] %v1075_v29  ;;  %1171 = vst [vmem:[%s2078_s24 + $0x1c0] sm:$0xff] %v1107_v30  ;;  %v1076_v35 = vmax.f32 %v896_v31, 0.0  ;;  %v1108_v36 = vmax.f32 %v1024_v32, 0.0 }
 0x1d6   : > { %1140 = vst [vmem:[%s2078_s24 + $0xc8] sm:$0xff] %v1076_v35  ;;  %1172 = vst [vmem:[%s2078_s24 + $0x1c8] sm:$0xff] %v1108_v36 }
 0x1d7   : > { %v900_v37 = vpop.f32.mrb[52].mxu0  ;;  %v1028_v38 = vpop.f32.mrb[52].mxu1 }
 0x1d8   : > { %v901_v39 = vadd.f32 %v2070_v17, %v900_v37  ;;  %v1029_v40 = vadd.f32 %v2070_v17, %v1028_v38  ;;  %v902_v41 = vpop.f32.mrb[53].mxu0  ;;  %v1030_v42 = vpop.f32.mrb[53].mxu1 }
 0x1d9   : > { %v903_v43 = vpop.f32.mrb[54].mxu0  ;;  %v1031_v44 = vpop.f32.mrb[54].mxu1 }
 0x1da   : > { %v1077_v45 = vmax.f32 %v901_v39, 0.0  ;;  %v1109_v46 = vmax.f32 %v1029_v40, 0.0  ;;  %v904_v47 = vadd.f32 %v2070_v17, %v903_v43  ;;  %v1032_v48 = vadd.f32 %v2070_v17, %v1031_v44  ;;  %v905_v49 = vpop.f32.mrb[55].mxu0  ;;  %v1033_v50 = vpop.f32.mrb[55].mxu1 }
 0x1dc   : > { %1141 = vst [vmem:[%s2078_s24 + $0xd0] sm:$0xff] %v1077_v45  ;;  %1173 = vst [vmem:[%s2078_s24 + $0x1d0] sm:$0xff] %v1109_v46  ;;  %v1078_v51 = vmax.f32 %v904_v47, 0.0  ;;  %v1110_v52 = vmax.f32 %v1032_v48, 0.0 }
 0x1de   : > { %1142 = vst [vmem:[%s2078_s24 + $0xd8] sm:$0xff] %v1078_v51  ;;  %1174 = vst [vmem:[%s2078_s24 + $0x1d8] sm:$0xff] %v1110_v52 }
 0x1df   : > { %v908_v53 = vpop.f32.mrb[56].mxu0  ;;  %v1036_v54 = vpop.f32.mrb[56].mxu1 }
 0x1e0   : > { %v909_v55 = vadd.f32 %v2070_v17, %v908_v53  ;;  %v1037_v56 = vadd.f32 %v2070_v17, %v1036_v54  ;;  %v910_v57 = vpop.f32.mrb[57].mxu0  ;;  %v1038_v58 = vpop.f32.mrb[57].mxu1 }
 0x1e1   : > { %v911_v59 = vpop.f32.mrb[58].mxu0  ;;  %v1039_v60 = vpop.f32.mrb[58].mxu1 }
 0x1e2   : > { %v1079_v61 = vmax.f32 %v909_v55, 0.0  ;;  %v1111_v62 = vmax.f32 %v1037_v56, 0.0  ;;  %v912_v63 = vadd.f32 %v2070_v17, %v911_v59  ;;  %v1040_v0 = vadd.f32 %v2070_v17, %v1039_v60  ;;  %v913_v1 = vpop.f32.mrb[59].mxu0  ;;  %v1041_v2 = vpop.f32.mrb[59].mxu1 }
 0x1e4   : > { %1143 = vst [vmem:[%s2078_s24 + $0xe0] sm:$0xff] %v1079_v61  ;;  %1175 = vst [vmem:[%s2078_s24 + $0x1e0] sm:$0xff] %v1111_v62  ;;  %v1080_v3 = vmax.f32 %v912_v63, 0.0  ;;  %v1112_v4 = vmax.f32 %v1040_v0, 0.0 }
 0x1e6   : > { %1144 = vst [vmem:[%s2078_s24 + $0xe8] sm:$0xff] %v1080_v3  ;;  %1176 = vst [vmem:[%s2078_s24 + $0x1e8] sm:$0xff] %v1112_v4 }
 0x1e7   : > { %v916_v5 = vpop.f32.mrb[60].mxu0  ;;  %v1044_v6 = vpop.f32.mrb[60].mxu1 }
 0x1e8   : > { %v917_v7 = vadd.f32 %v2070_v17, %v916_v5  ;;  %v1045_v8 = vadd.f32 %v2070_v17, %v1044_v6  ;;  %v918_v9 = vpop.f32.mrb[61].mxu0  ;;  %v1046_v10 = vpop.f32.mrb[61].mxu1 }
 0x1e9   : > { %v919_v11 = vpop.f32.mrb[62].mxu0  ;;  %v1047_v12 = vpop.f32.mrb[62].mxu1 }
 0x1ea   : > { %v1081_v13 = vmax.f32 %v917_v7, 0.0  ;;  %v1113_v14 = vmax.f32 %v1045_v8, 0.0  ;;  %v920_v15 = vadd.f32 %v2070_v17, %v919_v11  ;;  %v1048_v16 = vadd.f32 %v2070_v17, %v1047_v12  ;;  %v921_v18 = vpop.f32.mrb[63].mxu0  ;;  %v1049_v19 = vpop.f32.mrb[63].mxu1 }
 0x1ec   : > { %1145 = vst [vmem:[%s2078_s24 + $0xf0] sm:$0xff] %v1081_v13  ;;  %1177 = vst [vmem:[%s2078_s24 + $0x1f0] sm:$0xff] %v1113_v14  ;;  %v1082_v20 = vmax.f32 %v920_v15, 0.0  ;;  %v1114_v21 = vmax.f32 %v1048_v16, 0.0 }
 0x1ee   : > { %1146 = vst [vmem:[%s2078_s24 + $0xf8] sm:$0xff] %v1082_v20  ;;  %1178 = vst [vmem:[%s2078_s24 + $0x1f8] sm:$0xff] %v1114_v21 }
 0x1ef   : > { %1699 = shalt.err (!%p1696_p5)
}
 0x1f0   : > { %s1700_s25 = scalar_lea.hbm %s2205_s26, 8192  ;;  %s1704_s6 = scalar_lea.hbm %s2262_s3, 32768 }
 0x1f1   : > { %p1701_p9 = scmp.ne.s32.totalorder %s2205_s26, %s1700_s25  ;;  %p1705_p3 = scmp.lt.u32.totalorder %s2205_s26, %s2262_s3 }
 0x1f2   : > { %p1706_p7 = scmp.lt.u32.totalorder %s1704_s6, %s1700_s25  ;;  %p1708_p4 = scmp.lt.u32.totalorder %s1700_s25, %s2205_s26 }
 0x1f3   : > { %p1702_p1 = pnand %p1701_p9, %p1899_p11 }
 0x1f4   : > { %p1707_p13 = por %p1706_p7, %p1705_p3 }
 0x1f5   : > { %p1703_p2 = pneg %p1702_p1 }
 0x1f6   : > { %p1709_p6 = por %p1708_p4, %p1707_p13 }
 0x1f8   : > { %p1710_p8 = pnand %p1709_p6, %p1703_p2 }
 0x1fa   : > { %1713 = shalt.err (!%p1710_p8)
}
 0x1fb   : > { %s1782_s24 = smov 128   ;;  %s1783_s9 = smov 8  }
 0x1fc   : > { %1442 = dma.vmem_to_hbm [thread:$0]  (%p1899_p11), %s2207_s10, 8192, %s2205_s26, %s1180_s15, %s1782_s24, %s1782_s24, %s1783_s9  }
 0x1fd PF: > { %p1459_p12 = scmp.ge.s32.totalorder %s1772_s17, 2  ;;  %s1209_s11 = sand.u32 1, %s1752_s12  }
 0x1fe   : > { %p2280_p10 = scmp.ne.s32.totalorder %s2270_s23, 0  ;;  %s1210_s18 = scalar_lea.sflag [#allocation4], %s1209_s11 }
 0x200   : > { %p1453_p0 = pnand %p1459_p12, %p2280_p10 }
 0x202   : > { %1747 = dma.done.wait (!%p1453_p0), %s1210_s18, 8192  }
 0x203   : > { %1749 = vsyncadd (!%p1453_p0), %s1210_s18, 4294959104  ;;  %s20_s17 = sadd.s32 1, %s1772_s17   ;;  %s2281_s12 = smov %s1756_s13 }
 0x204   : > { %p17_p5 = scmp.ge.s32.totalorder %s20_s17, 6   ;;  %s2282_s13 = smov %s1760_s14 }
 0x205   : > { %s2283_s14 = smov %s1908_s5  ;;  %s2284_s15 = smov %s1768_s16 }
 0x206   : > { %s2285_s16 = smov %s2287_s28  ;;  %19 = sbr.rel (!%p17_p5) target bundleno = 7 (0x7), region = 85 }
 0x20d   :  { %1215 = vsyncpa [#allocation3], 1 }
 0x20e   :  { %1217 = vsyncpa [#allocation3 + $0x1], 1 }
 0x20f   :  { %1218 = vsyncpa [#allocation6], 1 }
 0x210   :  { %1219 = vsyncpa [#allocation4], 1 }
 0x211   :  { %1221 = vsyncpa [#allocation4 + $0x1], 1 }

</bundles_post_ra>
